<compile_context>
chip_gen: v5e
topology: v5e:2x2
jax: 0.10.0
libtpu: 0.0.40
codegen_flags: <defaults>
</compile_context>

<pallas_src>
import jax
import jax.numpy as jnp
from jax import lax
from jax.experimental import pallas as pl
from jax.experimental.pallas import tpu as pltpu

_MIB = 1024 * 1024


def _signal_kernel(shT_ref, x_ref, o_ref):
    # shT_ref: [V, C]   (resident across the grid)
    # x_ref:   [TN, C, S]
    # o_ref:   [TN, V, S]
    shT = shT_ref[...]                     # hoisted: loaded once per grid step
    tn = x_ref.shape[0]

    def body(i, carry):
        # One MXU matmul per n: [V, C] @ [C, S] -> [V, S], f32 accumulate,
        # narrowing cast happens directly on the store path (no materialized
        # [TN, V, S] f32 intermediate and no [TN, V, C] broadcast weights).
        o_ref[i] = jnp.dot(
            shT, x_ref[i], preferred_element_type=jnp.float32
        ).astype(o_ref.dtype)
        return carry

    lax.fori_loop(0, tn, body, 0, unroll=(tn <= 8))


def _tpu_generation():
    try:
        kind = jax.devices()[0].device_kind.lower()
    except Exception:
        return "unknown"
    for tag in ("v5", "v6", "v7"):
        if tag in kind:
            return tag
    return "unknown"


def _budgets(gen):
    """(tn sizing budget, per-step input-slab target, vmem_limit_bytes)."""
    if gen == "v5":
        # 128 MiB VMEM, ~0.82 TB/s HBM: 2 MiB input slabs already amortize the
        # ~0.35 us/step overhead; traffic reduction dominates on this gen.
        return 80 * _MIB, 2 * _MIB, 100 * _MIB
    if gen == "v6":
        # 128 MiB VMEM, ~1.4 TB/s HBM: use the headroom for big slabs.
        return 88 * _MIB, 8 * _MIB, 112 * _MIB
    # v7x (only 64 MiB VMEM per TC, 3.2 TB/s HBM) or unknown: conservative.
    return 44 * _MIB, 6 * _MIB, 52 * _MIB


def _choose_block_n(N, x_row, o_row, vmem_budget, slab_target):
    """Rows of n per grid step.  Prefers an exact divisor of N (no tail)."""
    vmem_per_row = 2 * x_row + 2 * o_row          # double-buffered in + out
    tn_vmem = max(1, vmem_budget // vmem_per_row)
    tn_slab = max(1, slab_target // x_row)
    # Keep >= 4 grid steps when N allows, so both v7x TensorCores get >= 2
    # pipelined steps each (and megacore sharding has something to split).
    if N >= 8:
        steps_cap = N // 4
    elif N >= 2:
        steps_cap = N // 2
    else:
        steps_cap = 1
    cap = max(1, min(tn_vmem, tn_slab, steps_cap, N))
    # Largest divisor of N not exceeding cap -> exact tiling, no pad/slice.
    best = 1
    for d in range(1, cap + 1):
        if N % d == 0:
            best = d
    if best * 8 >= cap:
        return best            # good divisor: no padding needed
    return cap                 # pathological N (e.g. prime): fall back to pad


def compute_signal(x, sh2s, *, out_dtype=None):
    """Pallas equivalent of torch.einsum('ijklmn,kp->ijplmn', x, SH2S).

    Args:
        x:         [B, in_channels, C, X, Y, Z].  Pass it already in bf16 if
                   narrower input traffic is wanted (casting here would add a
                   full extra HBM pass, so we don't).
        sh2s:      [C, V] spherical-harmonic -> signal matrix.
        out_dtype: optional output dtype (e.g. jnp.bfloat16).  The narrowing
                   cast happens on the in-kernel store path, cutting output
                   HBM traffic (the larger stream when V > C) with no extra
                   passes.  Defaults to x.dtype.
    Returns:
        [B, in_channels, V, X, Y, Z].
    """
    B, IC, C, X, Y, Z = x.shape
    Cw, V = sh2s.shape
    assert C == Cw, f"SH2S first dim {Cw} must match x's C dim {C}"
    N = B * IC
    S = X * Y * Z
    out_dtype = x.dtype if out_dtype is None else jnp.dtype(out_dtype)

    x_flat = x.reshape(N, C, S)              # contiguous reshape: free
    shT = sh2s.T.astype(x.dtype)             # [V, C]; tiny one-time transpose

    gen = _tpu_generation()
    vmem_budget, slab_target, vmem_limit = _budgets(gen)
    x_row = C * S * jnp.dtype(x_flat.dtype).itemsize
    o_row = V * S * jnp.dtype(out_dtype).itemsize
    tn = _choose_block_n(N, x_row, o_row, vmem_budget, slab_target)

    n_pad = pl.cdiv(N, tn) * tn
    if n_pad != N:
        # Only reached for pathological N (near-prime); typical N = B*IC gets
        # an exact divisor above and skips these two extra HBM passes.
        x_flat = jnp.pad(x_flat, ((0, n_pad - N), (0, 0), (0, 0)))
    grid_steps = n_pad // tn

    def run(dim_sem):
        return pl.pallas_call(
            _signal_kernel,
            out_shape=jax.ShapeDtypeStruct((n_pad, V, S), out_dtype),
            grid_spec=pltpu.PrefetchScalarGridSpec(
                num_scalar_prefetch=0,
                grid=(grid_steps,),
                in_specs=[
                    pl.BlockSpec((V, C), lambda i: (0, 0)),         # SH2S^T resident
                    pl.BlockSpec((tn, C, S), lambda i: (i, 0, 0)),  # TN-row x slab
                ],
                out_specs=pl.BlockSpec((tn, V, S), lambda i: (i, 0, 0)),
            ),
            compiler_params=pltpu.CompilerParams(
                dimension_semantics=dim_sem,
                vmem_limit_bytes=vmem_limit,
            ),
        )(shT, x_flat)

    # On v7x, explicitly shard the n grid axis across the two TensorCores;
    # fall back to the plain parallel annotation anywhere it's unsupported.
    if gen == "v7" and grid_steps % 2 == 0 and hasattr(pltpu, "CORE_PARALLEL"):
        try:
            out_flat = run((pltpu.CORE_PARALLEL,))
        except Exception:
            out_flat = run((pltpu.PARALLEL,))
    else:
        out_flat = run((pltpu.PARALLEL,))

    if n_pad != N:
        out_flat = out_flat[:N]
    # NOTE: the output block's last dim is S, which is lane-dense whenever
    # S = X*Y*Z is a multiple of 128 (true for realistic volumes).  For tiny S
    # (the demo uses S = 64) we accept partially masked stores: the op stays
    # HBM-bound there, so an in-kernel lane-concat relayout isn't worth it.
    return out_flat.reshape(B, IC, V, X, Y, Z)


if __name__ == "__main__":
    key = jax.random.PRNGKey(0)
    k_x, k_sh = jax.random.split(key)

    # Small shapes consistent with the module's forward:
    # x: [B, in_channels, C, X, Y, Z], SH2S: [C, V]
    B, IC, C, X, Y, Z = 2, 4, 16, 4, 4, 4
    V = 32

    x = jax.random.normal(k_x, (B, IC, C, X, Y, Z), dtype=jnp.float32)
    sh2s = jax.random.normal(k_sh, (C, V), dtype=jnp.float32)

    out = compute_signal(x, sh2s)
    out = jax.block_until_ready(out)

    # Reference check (plain JAX einsum, same semantics as the torch module).
    ref = jnp.einsum("ijklmn,kp->ijplmn", x, sh2s)
    assert out.shape == (B, IC, V, X, Y, Z)
    assert out.dtype == x.dtype
    assert jnp.allclose(out, ref, atol=1e-4, rtol=1e-4)

    # Narrow-output path: cast happens on the in-kernel store (traffic lever).
    out_bf16 = jax.block_until_ready(
        compute_signal(x, sh2s, out_dtype=jnp.bfloat16))
    assert out_bf16.dtype == jnp.bfloat16
    assert jnp.allclose(out_bf16.astype(jnp.float32), ref, atol=0.25, rtol=0.05)

    print("KERNEL_OK")
</pallas_src>

<mosaic_0001>
module attributes {stable_mosaic.version = 11 : i64} {
  func.func @_signal_kernel(%arg0: i32, %arg1: memref<32x16xf32, #tpu.memory_space<vmem>>, %arg2: memref<2x16x64xf32, #tpu.memory_space<vmem>>, %arg3: memref<2x32x64xf32, #tpu.memory_space<vmem>>) attributes {dimension_semantics = [#tpu.dimension_semantics<parallel>], iteration_bounds = array<i64: 4>, scalar_prefetch = 0 : i64, scratch_operands = 0 : i64, tpu.core_type = #tpu.core_type<tc>, window_params = [{pipeline_mode = #tpu.pipeline_mode<synchronous>, transform_indices = @transform_0, window_bounds = array<i64: 32, 16>}, {transform_indices = @transform_1, window_bounds = array<i64: 2, 16, 64>}, {transform_indices = @transform_2, window_bounds = array<i64: 2, 32, 64>}]} {
    %c0 = arith.constant 0 : index
    %c0_0 = arith.constant 0 : index
    %0 = vector.load %arg1[%c0, %c0_0] : memref<32x16xf32, #tpu.memory_space<vmem>>, vector<32x16xf32>
    %c0_i32 = arith.constant 0 : i32
    %1 = arith.index_cast %c0_i32 : i32 to index
    %c0_1 = arith.constant 0 : index
    %c0_2 = arith.constant 0 : index
    %2 = vector.load %arg2[%1, %c0_1, %c0_2] : memref<2x16x64xf32, #tpu.memory_space<vmem>>, vector<1x16x64xf32>
    %3 = vector.shape_cast %2 : vector<1x16x64xf32> to vector<16x64xf32>
    %cst = arith.constant dense<0.000000e+00> : vector<32x64xf32>
    %4 = tpu.matmul %0, %3, %cst {dimension_numbers = #tpu.dot_dimension_numbers<[1], [0], [0], [1], [0, 0, 1, 1], [], []>} : vector<32x16xf32>, vector<16x64xf32>, vector<32x64xf32> -> vector<32x64xf32>
    %5 = arith.index_cast %c0_i32 : i32 to index
    %c0_3 = arith.constant 0 : index
    %c0_4 = arith.constant 0 : index
    %6 = vector.load %arg3[%5, %c0_3, %c0_4] : memref<2x32x64xf32, #tpu.memory_space<vmem>>, vector<1x32x64xf32>
    %7 = vector.shape_cast %6 : vector<1x32x64xf32> to vector<32x64xf32>
    %8 = vector.shape_cast %4 : vector<32x64xf32> to vector<1x32x64xf32>
    tpu.vector_store %arg3[%5, %c0_3, %c0_4], %8 {strides = array<i32>} : memref<2x32x64xf32, #tpu.memory_space<vmem>>, vector<1x32x64xf32>,
    %c1_i32 = arith.constant 1 : i32
    %9 = arith.index_cast %c1_i32 : i32 to index
    %c0_5 = arith.constant 0 : index
    %c0_6 = arith.constant 0 : index
    %10 = vector.load %arg2[%9, %c0_5, %c0_6] : memref<2x16x64xf32, #tpu.memory_space<vmem>>, vector<1x16x64xf32>
    %11 = vector.shape_cast %10 : vector<1x16x64xf32> to vector<16x64xf32>
    %cst_7 = arith.constant dense<0.000000e+00> : vector<32x64xf32>
    %12 = tpu.matmul %0, %11, %cst_7 {dimension_numbers = #tpu.dot_dimension_numbers<[1], [0], [0], [1], [0, 0, 1, 1], [], []>} : vector<32x16xf32>, vector<16x64xf32>, vector<32x64xf32> -> vector<32x64xf32>
    %13 = arith.index_cast %c1_i32 : i32 to index
    %c0_8 = arith.constant 0 : index
    %c0_9 = arith.constant 0 : index
    %14 = vector.load %arg3[%13, %c0_8, %c0_9] : memref<2x32x64xf32, #tpu.memory_space<vmem>>, vector<1x32x64xf32>
    %15 = vector.shape_cast %14 : vector<1x32x64xf32> to vector<32x64xf32>
    %16 = vector.shape_cast %12 : vector<32x64xf32> to vector<1x32x64xf32>
    tpu.vector_store %arg3[%13, %c0_8, %c0_9], %16 {strides = array<i32>} : memref<2x32x64xf32, #tpu.memory_space<vmem>>, vector<1x32x64xf32>,
    %c2_i32 = arith.constant 2 : i32
    return
  }
  func.func @transform_0(%arg0: i32) -> (i32, i32) {
    %c0_i32 = arith.constant 0 : i32
    %c0_i32_0 = arith.constant 0 : i32
    %c0_i32_1 = arith.constant 0 : i32
    return %c0_i32, %c0_i32_0 : i32, i32
  }
  func.func @transform_1(%arg0: i32) -> (i32, i32, i32) {
    %c0_i32 = arith.constant 0 : i32
    %c0_i32_0 = arith.constant 0 : i32
    %c0_i32_1 = arith.constant 0 : i32
    return %arg0, %c0_i32, %c0_i32_0 : i32, i32, i32
  }
  func.func @transform_2(%arg0: i32) -> (i32, i32, i32) {
    %c0_i32 = arith.constant 0 : i32
    %c0_i32_0 = arith.constant 0 : i32
    %c0_i32_1 = arith.constant 0 : i32
    return %arg0, %c0_i32, %c0_i32_0 : i32, i32, i32
  }
}

</mosaic_0001>

<bundles_post_ra>
// kernel: tpu_custom_call.1
= control target key start
LH: loop header
LB: loop body
LE: loop exit
PB: predicated region body
PF: predicated region fallthrough
CT: control target
= control target key end

     0   :  { %7 = vsyncpa [#allocation3], 0  ;;  %s706_s0 = inlined_call_operand.vmem [shape: f32[32,16], index: 0, kind: input, shape index: {}]   ;;  %s707_s1 = inlined_call_operand.hbm [shape: f32[8,16,64], index: 1, kind: input, shape index: {}]   ;;  %s708_s2 = inlined_call_operand.hbm [shape: f32[8,32,64], index: 2, kind: output, shape index: {}]  }
   0x1   :  { %9 = vsyncpa [#allocation3 + $0x1], 0 }
   0x2   :  { %10 = vsyncpa [#allocation4], 0 }
   0x3   :  { %12 = vsyncpa [#allocation4 + $0x1], 0  ;;  %s552_s9 = smov 0   ;;  %s554_s10 = smov 0  }
   0x4   :  { %s556_s11 = smov 0   ;;  %s558_s12 = smov 0  }
   0x5 LB: > { %s573_s13 = sadd.s32 4294967295, %s531_s12   ;;  %s347_s14 = sadd.s32 4294967294, %s531_s12   ;;  %s531_s12 = sphi %s558_s12, %s717_s12   ;;  %s527_s11 = sphi %s556_s11, %s716_s11   ;;  %s523_s10 = sphi %s554_s10, %s715_s10   ;;  %s519_s9 = sphi %s552_s9, %s714_s9  }
   0x6   : > { %s577_s15 = sadd.s32 1, %s531_s12   ;;  %s46_s16 = sadd.s32 1, %s527_s11 }
   0x7   : > { %s43_s17 = ssub.s32 %s531_s12, %s577_s15  ;;  %p53_p0 = scmp.ne.s32.totalorder %s527_s11, %s523_s10 }
   0x8   : > { %p44_p1 = scmp.eq.s32.totalorder %s43_s17, 0  ;;  %p54_p2 = scmp.eq.s32.totalorder %s531_s12, 0 }
   0x9   : > { %p59_p3 = scmp.ne.s32.totalorder %s523_s10, %s519_s9  ;;  %p60_p4 = scmp.eq.s32.totalorder %s573_s13, 0 }
   0xa   : > { %s589_s18 = scalar_select %p44_p1, %s527_s11, %s46_s16  }
   0xb   : > { %p591_p5 = por %p54_p2, %p53_p0  ;;  %p595_p6 = por %p60_p4, %p59_p3 }
   0xc   : > { %p83_p7 = scmp.eq.s32.totalorder %s573_s13, 3  ;;  %p89_p8 = scmp.eq.s32.totalorder %s347_s14, 3 }
   0xd   : > { %p397_p9 = scmp.lt.s32.totalorder %s531_s12, 4  ;;  %s112_s23 = sand.u32 1, %s527_s11  }
   0xe   : > { %p601_p10 = por %p83_p7, %p53_p0  ;;  %p605_p11 = por %p89_p8, %p59_p3 }
   0xf   : > { %s378_s24 = sshll.u32 %s531_s12, 5  ;;  %s350_s25 = sshll.u32 %s112_s23, 5 }
  0x10   : > { %s122_s28 = scalar_lea.hbm %s707_s1, %s378_s24  ;;  %s116_s30 = scalar_lea.vmem [#allocation2], %s350_s25 }
  0x11   : > { %s123_s29 = sshll.u32 %s122_s28, 4  ;;  %s125_s3 = sshll.u32 %s116_s30, 4  ;;  %s124_s29 = int_to_ptr.hbm [resolvable:$true] %s123_s29  ;;  %s126_s3 = int_to_ptr.vmem [resolvable:$true] %s125_s3 }
  0x12   : > { %p616_p12 = pnand %p397_p9, %p591_p5  ;;  %p354_p13 = scmp.ge.s32.totalorder %s531_s12, 1 }
  0x13   : > { %p133_p0 = scmp.lt.s32.totalorder %s531_s12, 5  ;;  %s113_s5 = scalar_lea.sflag [#allocation3], %s112_s23 }
  0x14   : > { %s435_s6 = sshra.s32 %s124_s29, 4  ;;  %p439_p2 = pneg %p616_p12  ;;  %s436_s6 = int_to_ptr.hbm [resolvable:$true] %s435_s6 }
  0x15   : > { %s437_s7 = scalar_lea.hbm %s436_s6, 32  ;;  %s442_s16 = scalar_lea.hbm %s707_s1, 128 }
  0x16   : > { %p438_p1 = scmp.ne.s32.totalorder %s436_s6, %s437_s7  ;;  %p443_p5 = scmp.lt.s32.totalorder %s436_s6, %s707_s1 }
  0x17   : > { %p444_p7 = scmp.lt.s32.totalorder %s442_s16, %s437_s7 }
  0x18   : > { %p440_p3 = pnand %p439_p2, %p438_p1 }
  0x19   : > { %p445_p8 = por %p444_p7, %p443_p5 }
  0x1a   : > { %p441_p4 = pneg %p440_p3 }
  0x1c   : > { %p446_p9 = pnand %p445_p8, %p441_p4 }
  0x1e   : > { %449 = shalt.err (!%p446_p9)
}
  0x1f   : > { %s533_s23 = smov 128   ;;  %s534_s24 = smov 8  }
  0x20   : > { %392 = dma.hbm_to_vmem [thread:$0]  (!%p616_p12), %s124_s29, 512, %s126_s3, %s113_s5, %s533_s23, %s533_s23, %s534_s24  }
  0x21   : > { %p134_p1 = pnand %p354_p13, %p133_p0 }
  0x22   : > { %s637_s25 = sand.u32 (!%p134_p1), 1, %s523_s10  }
  0x23   : > { %137 = sbr.rel (%p134_p1) target bundleno = 190 (0xbe), region = 28  ;;  %s355_s26 = sshll.u32 (!%p134_p1), %s637_s25, 5 }
  0x24   : > { %s140_s27 = scalar_lea.sflag (!%p134_p1), [#allocation3], %s637_s25  ;;  %s143_s28 = scalar_lea.vmem (!%p134_p1), [#allocation2], %s355_s26 }
  0x28   : > { %510 = dma.done.wait (%p595_p6), %s140_s27, 512  }
  0x29   : > { %512 = vsyncadd (%p595_p6), %s140_s27, 4294966784  ;;  %v172_v0 = vld [vmem:[%s143_s28 + $0x8] sm:$0xff]  ;;  %v362_v1 = vld [vmem:[%s143_s28 + $0x18] sm:$0xff]  ;;  %vm173_vm0 = vcmask 130048   ;;  %s356_s8 = sshll.u32 %s637_s25, 6  ;;  %vm215_vm1 = vcmask 523264  }
  0x2a   : > { %v171_v2 = vld [vmem:[%s143_s28] sm:$0xff]  ;;  %381 = vmatpush.msra.mxu2 %v172_v0  ;;  %383 = vmatpush.msra.mxu3 %v362_v1  ;;  %v361_v3 = vld [vmem:[%s143_s28 + $0x10] sm:$0xff]  ;;  %v170_v6 = vld [vmem:[%s706_s0 + $0x18] sm:$0xff]  ;;  %s164_s14 = scalar_lea.vmem [#allocation5], %s356_s8  ;;  %s380_s16 = sshll.u32 %s573_s13, 6 }
  0x2b   : > { %v169_v4 = vld [vmem:[%s706_s0 + $0x10] sm:$0xff]  ;;  %200 = vmatpush.msra.mxu0 %v172_v0  ;;  %237 = vmatpush.msra.mxu1 %v362_v1  ;;  %v167_v5 = vld [vmem:[%s706_s0] sm:$0xff]  ;;  %v168_v7 = vld [vmem:[%s706_s0 + $0x8] sm:$0xff]  ;;  %s270_s23 = scalar_lea.hbm %s708_s2, %s380_s16  ;;  %s271_s24 = sshll.u32 %s164_s14, 4  ;;  %s272_s24 = int_to_ptr.vmem [resolvable:$true] %s271_s24 }
  0x2c   : > { %382 = vmatpush.msra.mxu2 %v171_v2  ;;  %384 = vmatpush.msra.mxu3 %v361_v3  ;;  %s273_s26 = sshll.u32 %s270_s23, 4  ;;  %s258_s13 = scalar_lea.sflag [#allocation4], %s637_s25  ;;  %s274_s26 = int_to_ptr.hbm [resolvable:$true] %s273_s26 }
  0x2d   : > { %359 = vmatmul.msk.f32.vlgmr.msra.gmra.mxu2 %vm173_vm0, %v169_v4  ;;  %365 = vmatmul.msk.f32.vlgmr.msra.gmra.mxu3 %vm173_vm0, %v169_v4  ;;  %s479_s27 = sshra.s32 %s274_s26, 4  ;;  %s485_s3 = scalar_lea.hbm %s708_s2, 256  ;;  %s480_s27 = int_to_ptr.hbm [resolvable:$true] %s479_s27 }
  0x2e   : > { %201 = vmatpush.msra.mxu0 %v171_v2  ;;  %238 = vmatpush.msra.mxu1 %v361_v3  ;;  %s481_s28 = scalar_lea.hbm %s480_s27, 64  ;;  %p486_p0 = scmp.lt.s32.totalorder %s480_s27, %s708_s2 }
  0x2f   : > { %357 = vmatmul.msk.f32.vlgmr.msra.gmra.mxu0 %vm173_vm0, %v167_v5  ;;  %363 = vmatmul.msk.f32.vlgmr.msra.gmra.mxu1 %vm173_vm0, %v167_v5  ;;  %p482_p6 = scmp.ne.s32.totalorder %s480_s27, %s481_s28  ;;  %p487_p2 = scmp.lt.s32.totalorder %s485_s3, %s481_s28 }
  0x31   : > { %p483_p12 = pnand %p482_p6, %p601_p10  ;;  %p488_p3 = por %p487_p2, %p486_p0 }
  0x33   : > { %p484_p13 = pneg %p483_p12 }
  0x35   : > { %360 = vmatmul.msk.f32.gmra.mxu2 %vm173_vm0, %v170_v6  ;;  %366 = vmatmul.msk.f32.gmra.mxu3 %vm173_vm0, %v170_v6  ;;  %p489_p4 = pnand %p488_p3, %p484_p13 }
  0x37   : > { %358 = vmatmul.msk.f32.gmra.mxu0 %vm173_vm0, %v168_v7  ;;  %364 = vmatmul.msk.f32.gmra.mxu1 %vm173_vm0, %v168_v7 }
  0xac   : > { %v203_v8 = vpop.f32.mrf.mxu0  ;;  %v240_v9 = vpop.f32.mrf.mxu1 }
  0xad   : > { %216 = vst.msk [vmem:[%s164_s14] sm:$0xff] %vm215_vm1, %v203_v8 }
  0xae   : > { %367 = vst.msk [vmem:[%s164_s14 + $0x20] sm:$0xff] %vm215_vm1, %v240_v9 }
  0xb0   : > { %v209_v10 = vpop.f32.mrf.mxu2  ;;  %v246_v11 = vpop.f32.mrf.mxu3 }
  0xb1   : > { %218 = vst.msk [vmem:[%s164_s14 + $0x10] sm:$0xff] %vm215_vm1, %v209_v10 }
  0xb2   : > { %369 = vst.msk [vmem:[%s164_s14 + $0x30] sm:$0xff] %vm215_vm1, %v246_v11 }
  0xb4   : > { %v206_v12 = vpop.f32.mrf.mxu0  ;;  %v243_v13 = vpop.f32.mrf.mxu1 }
  0xb5   : > { %217 = vst.msk [vmem:[%s164_s14 + $0x8] sm:$0xff] %vm215_vm1, %v206_v12 }
  0xb6   : > { %368 = vst.msk [vmem:[%s164_s14 + $0x28] sm:$0xff] %vm215_vm1, %v243_v13 }
  0xb8   : > { %v212_v14 = vpop.f32.mrf.mxu2  ;;  %v249_v15 = vpop.f32.mrf.mxu3 }
  0xb9   : > { %219 = vst.msk [vmem:[%s164_s14 + $0x18] sm:$0xff] %vm215_vm1, %v212_v14 }
  0xba   : > { %370 = vst.msk [vmem:[%s164_s14 + $0x38] sm:$0xff] %vm215_vm1, %v249_v15 }
  0xbb   : > { %492 = shalt.err (!%p489_p4)
}
  0xbc   : > { %s535_s25 = smov 128   ;;  %s536_s5 = smov 8  }
  0xbd   : > { %387 = dma.vmem_to_hbm [thread:$0]  (%p601_p10), %s272_s24, 1024, %s274_s26, %s258_s13, %s535_s25, %s535_s25, %s536_s5  }
  0xbe PF: > { %p398_p5 = scmp.ge.s32.totalorder %s531_s12, 2  ;;  %s288_s6 = sand.u32 1, %s519_s9  }
  0xbf   : > { %s289_s7 = scalar_lea.sflag [#allocation4], %s288_s6 }
  0xc0   : > { %p394_p7 = pnand %p398_p5, %p605_p11 }
  0xc2   : > { %p395_p8 = pneg %p394_p7 }
  0xc4   : > { %514 = dma.done.wait (%p395_p8), %s289_s7, 1024  }
  0xc5   : > { %516 = vsyncadd (%p395_p8), %s289_s7, 4294966272  ;;  %p15_p9 = scmp.ge.s32.totalorder %s577_s15, 6   ;;  %s714_s9 = smov %s523_s10 }
  0xc6   : > { %s715_s10 = smov %s527_s11  ;;  %s716_s11 = smov %s589_s18 }
  0xc7   : > { %s717_s12 = smov %s577_s15  ;;  %17 = sbr.rel (!%p15_p9) target bundleno = 5 (0x5), region = 75 }
  0xcc   :  { %295 = vsyncpa [#allocation3], 1 }
  0xcd   :  { %297 = vsyncpa [#allocation3 + $0x1], 1 }
  0xce   :  { %298 = vsyncpa [#allocation4], 1 }
  0xcf   :  { %300 = vsyncpa [#allocation4 + $0x1], 1 }

</bundles_post_ra>
